<compile_context>
chip_gen: v6e
topology: v6e:2x2x1
jax: 0.10.0
libtpu: 0.0.40
codegen_flags: <defaults>
</compile_context>

<pallas_src>
import jax
import jax.numpy as jnp
from jax.experimental import pallas as pl
from jax.experimental.pallas import tpu as pltpu

DIM_THETA = 24 * 3 + 10   # 82
NUM_IN = 2 * 14           # 28
K_PAD = 128               # lane-padded input feature dim  (28 -> 128, zero filled)
OUT_PAD = 128             # lane-padded output feature dim (82 -> 128, zero filled)
BN_EPS = 1e-5


def _round_up(a, b):
    return (a + b - 1) // b * b


def resnet_kernel(x_ref, w1_ref, b1_ref,
                  m1_wa_ref, m1_ba_ref, m1_wb_ref, m1_bb_ref,
                  m2_wa_ref, m2_ba_ref, m2_wb_ref, m2_bb_ref,
                  w2_ref, b2_ref,
                  out_ref):
    # x tile: (TM, K_PAD) bf16. Weights: bf16, stored (in, out). Biases: fp32 (1, out).
    # BN is folded into the following Linear weight; Dropout is identity (eval).
    x = x_ref[...]

    # linear1 (fp32 accumulation on the MXU)
    h = jnp.dot(x, w1_ref[...], preferred_element_type=jnp.float32) + b1_ref[...]

    def res_module(h, wa, ba, wb, bb):
        # [BN folded] -> Dropout(id) -> ReLU -> Linear
        y = jnp.maximum(h, 0.0).astype(jnp.bfloat16)
        y = jnp.dot(y, wa, preferred_element_type=jnp.float32) + ba
        # [BN folded] -> Dropout(id) -> ReLU -> Linear
        y = jnp.maximum(y, 0.0).astype(jnp.bfloat16)
        y = jnp.dot(y, wb, preferred_element_type=jnp.float32) + bb
        return y + h  # residual, fp32

    h = res_module(h, m1_wa_ref[...], m1_ba_ref[...], m1_wb_ref[...], m1_bb_ref[...])
    h = res_module(h, m2_wa_ref[...], m2_ba_ref[...], m2_wb_ref[...], m2_bb_ref[...])

    # linear2 -> lane-dense (TM, OUT_PAD); columns [0, 82) are the real thetas.
    out = jnp.dot(h.astype(jnp.bfloat16), w2_ref[...],
                  preferred_element_type=jnp.float32) + b2_ref[...]
    out_ref[...] = out


def resnet_forward(x, prepared, *, batch_tile=256):
    """x: (nb, 2, 14) float32 -> (thetas, betas, poses).

    batch_tile: 256 is a good default for v6e/v7x; use 128 on v5e.
    """
    nb = x.shape[0]
    x2d = x.reshape(nb, -1).astype(jnp.bfloat16)          # (nb, 28)

    # Pad batch to a sublane/tile multiple and features to a full lane tile.
    nb8 = _round_up(nb, 8)
    tm = min(batch_tile, nb8)
    nb_pad = _round_up(nb8, tm)
    xp = jnp.zeros((nb_pad, K_PAD), jnp.bfloat16).at[:nb, :NUM_IN].set(x2d)

    weights = (
        prepared["w1"], prepared["b1"],
        prepared["m1_wa"], prepared["m1_ba"], prepared["m1_wb"], prepared["m1_bb"],
        prepared["m2_wa"], prepared["m2_ba"], prepared["m2_wb"], prepared["m2_bb"],
        prepared["w2"], prepared["b2"],
    )

    def const_spec(a):
        # Whole-array block, constant across the batch grid -> stays VMEM-resident.
        n = a.ndim
        return pl.BlockSpec(a.shape, lambda i, n=n: (0,) * n)

    # Explicit VMEM budget: resident weights + double-buffered x/out tiles +
    # fp32 intermediates, with headroom; capped below v7x's 64 MiB physical VMEM.
    num_features = prepared["w1"].shape[1]
    weight_bytes = sum(int(w.size) * w.dtype.itemsize for w in weights)
    act_bytes = 2 * (tm * K_PAD * 2 + tm * OUT_PAD * 4)      # double-buffered in/out tiles
    live_bytes = 6 * tm * max(num_features, OUT_PAD) * 4     # fp32 intermediates
    vmem_budget = int(min(max(weight_bytes + act_bytes + live_bytes + (4 << 20),
                              8 << 20), 48 << 20))

    out_pad = pl.pallas_call(
        resnet_kernel,
        out_shape=jax.ShapeDtypeStruct((nb_pad, OUT_PAD), jnp.float32),
        grid=(nb_pad // tm,),
        in_specs=[pl.BlockSpec((tm, K_PAD), lambda i: (i, 0))] +
                 [const_spec(w) for w in weights],
        out_specs=pl.BlockSpec((tm, OUT_PAD), lambda i: (i, 0)),
        compiler_params=pltpu.CompilerParams(
            dimension_semantics=("parallel",),
            vmem_limit_bytes=vmem_budget),
    )(xp, *weights)

    thetas = out_pad[:nb, :DIM_THETA]
    betas = thetas[:, 0:10]
    poses = thetas[:, 10:82].reshape(-1, 24, 3)
    # TODO(synk): verts / j3d would come from SMPL(betas, poses) — not implemented.
    return thetas, betas, poses


def init_params(key, num_features):
    """PyTorch-equivalent init: Linear weights ~ N(0, 0.001), biases = 0.
    Weights stored transposed as (in, out) so the kernel computes x @ W + b."""
    ks = jax.random.split(key, 6)
    std = 0.001
    return {
        "w1": std * jax.random.normal(ks[0], (NUM_IN, num_features), jnp.float32),
        "b1": jnp.zeros((1, num_features), jnp.float32),
        "m1_wa": std * jax.random.normal(ks[1], (num_features, num_features), jnp.float32),
        "m1_ba": jnp.zeros((1, num_features), jnp.float32),
        "m1_wb": std * jax.random.normal(ks[2], (num_features, num_features), jnp.float32),
        "m1_bb": jnp.zeros((1, num_features), jnp.float32),
        "m2_wa": std * jax.random.normal(ks[3], (num_features, num_features), jnp.float32),
        "m2_ba": jnp.zeros((1, num_features), jnp.float32),
        "m2_wb": std * jax.random.normal(ks[4], (num_features, num_features), jnp.float32),
        "m2_bb": jnp.zeros((1, num_features), jnp.float32),
        "w2": std * jax.random.normal(ks[5], (num_features, DIM_THETA), jnp.float32),
        "b2": jnp.zeros((1, DIM_THETA), jnp.float32),
    }


def prepare_params(params):
    """Fold eval-mode BatchNorm1d (running mean=0, var=1, gamma=1, beta=0) into
    the following Linear:  relu(h * s) @ W == relu(h) @ (s * W) for s > 0.
    Pad w1's K dim (28 -> 128) and the output dim (82 -> 128) for lane-dense
    layouts, and cast weight matrices to bf16 (fp32 accumulation in-kernel).
    Note: if real trained BN stats are loaded, fold the per-channel scale/shift
    here the same way instead of the constant 1/sqrt(1+eps)."""
    s = 1.0 / jnp.sqrt(jnp.float32(1.0) + BN_EPS)
    num_features = params["w1"].shape[1]

    w1 = jnp.zeros((K_PAD, num_features), jnp.float32).at[:NUM_IN, :].set(params["w1"])
    w2 = jnp.zeros((num_features, OUT_PAD), jnp.float32).at[:, :DIM_THETA].set(params["w2"])
    b2 = jnp.zeros((1, OUT_PAD), jnp.float32).at[:, :DIM_THETA].set(params["b2"])

    return {
        "w1": w1.astype(jnp.bfloat16),
        "b1": params["b1"],
        "m1_wa": (s * params["m1_wa"]).astype(jnp.bfloat16),
        "m1_ba": params["m1_ba"],
        "m1_wb": (s * params["m1_wb"]).astype(jnp.bfloat16),
        "m1_bb": params["m1_bb"],
        "m2_wa": (s * params["m2_wa"]).astype(jnp.bfloat16),
        "m2_ba": params["m2_ba"],
        "m2_wb": (s * params["m2_wb"]).astype(jnp.bfloat16),
        "m2_bb": params["m2_bb"],
        "w2": w2.astype(jnp.bfloat16),
        "b2": b2,
    }


def resnet_reference_bf16(x, prepared):
    """Pure-JAX reference using the exact same bf16/fp32 math as the kernel."""
    nb = x.shape[0]
    h = x.reshape(nb, -1).astype(jnp.bfloat16)
    h = jnp.dot(h, prepared["w1"][:NUM_IN, :],
                preferred_element_type=jnp.float32) + prepared["b1"]

    def mod(h, wa, ba, wb, bb):
        y = jnp.dot(jnp.maximum(h, 0.0).astype(jnp.bfloat16), wa,
                    preferred_element_type=jnp.float32) + ba
        y = jnp.dot(jnp.maximum(y, 0.0).astype(jnp.bfloat16), wb,
                    preferred_element_type=jnp.float32) + bb
        return y + h

    h = mod(h, prepared["m1_wa"], prepared["m1_ba"], prepared["m1_wb"], prepared["m1_bb"])
    h = mod(h, prepared["m2_wa"], prepared["m2_ba"], prepared["m2_wb"], prepared["m2_bb"])
    out = jnp.dot(h.astype(jnp.bfloat16), prepared["w2"],
                  preferred_element_type=jnp.float32) + prepared["b2"]
    return out[:, :DIM_THETA]


def resnet_reference_fp32(x, params):
    """Full-precision reference matching the original PyTorch eval-mode forward."""
    nb = x.shape[0]
    h = x.reshape(nb, -1)
    s = 1.0 / jnp.sqrt(1.0 + BN_EPS)
    h = h @ params["w1"] + params["b1"]

    def mod(h, wa, ba, wb, bb):
        y = jnp.maximum(h * s, 0.0) @ wa + ba
        y = jnp.maximum(y * s, 0.0) @ wb + bb
        return y + h

    h = mod(h, params["m1_wa"], params["m1_ba"], params["m1_wb"], params["m1_bb"])
    h = mod(h, params["m2_wa"], params["m2_ba"], params["m2_wb"], params["m2_bb"])
    return (h @ params["w2"] + params["b2"])[:, :DIM_THETA]


if __name__ == "__main__":
    key = jax.random.PRNGKey(0)
    kx, kp = jax.random.split(key)

    nb = 2
    num_features = 32
    x = jax.random.normal(kx, (nb, 2, 14), jnp.float32)   # (nb, 2, 14) -> flattened (nb, 28)
    params = init_params(kp, num_features)
    prepared = prepare_params(params)

    thetas, betas, poses = resnet_forward(x, prepared)
    thetas = jax.block_until_ready(thetas)

    assert thetas.shape == (nb, DIM_THETA)
    assert betas.shape == (nb, 10)
    assert poses.shape == (nb, 24, 3)

    ref_bf16 = resnet_reference_bf16(x, prepared)   # same numerics as kernel
    ref_fp32 = resnet_reference_fp32(x, params)     # original module semantics
    assert jnp.allclose(thetas, ref_bf16, atol=1e-5, rtol=1e-3)
    assert jnp.allclose(thetas, ref_fp32, atol=1e-4, rtol=5e-2)

    print("KERNEL_OK")
</pallas_src>

<mosaic_0001>
module attributes {stable_mosaic.version = 11 : i64} {
  func.func @resnet_kernel(%arg0: i32, %arg1: memref<8x128xbf16, #tpu.memory_space<vmem>>, %arg2: memref<128x32xbf16, #tpu.memory_space<vmem>>, %arg3: memref<1x32xf32, #tpu.memory_space<vmem>>, %arg4: memref<32x32xbf16, #tpu.memory_space<vmem>>, %arg5: memref<1x32xf32, #tpu.memory_space<vmem>>, %arg6: memref<32x32xbf16, #tpu.memory_space<vmem>>, %arg7: memref<1x32xf32, #tpu.memory_space<vmem>>, %arg8: memref<32x32xbf16, #tpu.memory_space<vmem>>, %arg9: memref<1x32xf32, #tpu.memory_space<vmem>>, %arg10: memref<32x32xbf16, #tpu.memory_space<vmem>>, %arg11: memref<1x32xf32, #tpu.memory_space<vmem>>, %arg12: memref<32x128xbf16, #tpu.memory_space<vmem>>, %arg13: memref<1x128xf32, #tpu.memory_space<vmem>>, %arg14: memref<8x128xf32, #tpu.memory_space<vmem>>) attributes {dimension_semantics = [#tpu.dimension_semantics<parallel>], iteration_bounds = array<i64: 1>, scalar_prefetch = 0 : i64, scratch_operands = 0 : i64, tpu.core_type = #tpu.core_type<tc>, window_params = [{transform_indices = @transform_0, window_bounds = array<i64: 8, 128>}, {pipeline_mode = #tpu.pipeline_mode<synchronous>, transform_indices = @transform_1, window_bounds = array<i64: 128, 32>}, {pipeline_mode = #tpu.pipeline_mode<synchronous>, transform_indices = @transform_2, window_bounds = array<i64: 1, 32>}, {pipeline_mode = #tpu.pipeline_mode<synchronous>, transform_indices = @transform_3, window_bounds = array<i64: 32, 32>}, {pipeline_mode = #tpu.pipeline_mode<synchronous>, transform_indices = @transform_4, window_bounds = array<i64: 1, 32>}, {pipeline_mode = #tpu.pipeline_mode<synchronous>, transform_indices = @transform_5, window_bounds = array<i64: 32, 32>}, {pipeline_mode = #tpu.pipeline_mode<synchronous>, transform_indices = @transform_6, window_bounds = array<i64: 1, 32>}, {pipeline_mode = #tpu.pipeline_mode<synchronous>, transform_indices = @transform_7, window_bounds = array<i64: 32, 32>}, {pipeline_mode = #tpu.pipeline_mode<synchronous>, transform_indices = @transform_8, window_bounds = array<i64: 1, 32>}, {pipeline_mode = #tpu.pipeline_mode<synchronous>, transform_indices = @transform_9, window_bounds = array<i64: 32, 32>}, {pipeline_mode = #tpu.pipeline_mode<synchronous>, transform_indices = @transform_10, window_bounds = array<i64: 1, 32>}, {pipeline_mode = #tpu.pipeline_mode<synchronous>, transform_indices = @transform_11, window_bounds = array<i64: 32, 128>}, {pipeline_mode = #tpu.pipeline_mode<synchronous>, transform_indices = @transform_12, window_bounds = array<i64: 1, 128>}, {transform_indices = @transform_13, window_bounds = array<i64: 8, 128>}]} {
    %c0 = arith.constant 0 : index
    %c0_0 = arith.constant 0 : index
    %0 = vector.load %arg1[%c0, %c0_0] : memref<8x128xbf16, #tpu.memory_space<vmem>>, vector<8x128xbf16>
    %c0_1 = arith.constant 0 : index
    %c0_2 = arith.constant 0 : index
    %1 = vector.load %arg2[%c0_1, %c0_2] : memref<128x32xbf16, #tpu.memory_space<vmem>>, vector<128x32xbf16>
    %cst = arith.constant dense<0.000000e+00> : vector<8x32xf32>
    %2 = tpu.matmul %0, %1, %cst {dimension_numbers = #tpu.dot_dimension_numbers<[1], [0], [0], [1], [0, 0, 1, 1], [], []>} : vector<8x128xbf16>, vector<128x32xbf16>, vector<8x32xf32> -> vector<8x32xf32>
    %c0_3 = arith.constant 0 : index
    %c0_4 = arith.constant 0 : index
    %3 = vector.load %arg3[%c0_3, %c0_4] : memref<1x32xf32, #tpu.memory_space<vmem>>, vector<1x32xf32>
    %4 = vector.broadcast %3 : vector<1x32xf32> to vector<8x32xf32>
    %5 = arith.addf %2, %4 : vector<8x32xf32>
    %c0_5 = arith.constant 0 : index
    %c0_6 = arith.constant 0 : index
    %6 = vector.load %arg4[%c0_5, %c0_6] : memref<32x32xbf16, #tpu.memory_space<vmem>>, vector<32x32xbf16>
    %c0_7 = arith.constant 0 : index
    %c0_8 = arith.constant 0 : index
    %7 = vector.load %arg5[%c0_7, %c0_8] : memref<1x32xf32, #tpu.memory_space<vmem>>, vector<1x32xf32>
    %c0_9 = arith.constant 0 : index
    %c0_10 = arith.constant 0 : index
    %8 = vector.load %arg6[%c0_9, %c0_10] : memref<32x32xbf16, #tpu.memory_space<vmem>>, vector<32x32xbf16>
    %c0_11 = arith.constant 0 : index
    %c0_12 = arith.constant 0 : index
    %9 = vector.load %arg7[%c0_11, %c0_12] : memref<1x32xf32, #tpu.memory_space<vmem>>, vector<1x32xf32>
    %cst_13 = arith.constant 0.000000e+00 : f32
    %10 = vector.broadcast %cst_13 : f32 to vector<8x32xf32>
    %11 = arith.maximumf %5, %10 : vector<8x32xf32>
    %12 = arith.truncf %11 : vector<8x32xf32> to vector<8x32xbf16>
    %cst_14 = arith.constant dense<0.000000e+00> : vector<8x32xf32>
    %13 = tpu.matmul %12, %6, %cst_14 {dimension_numbers = #tpu.dot_dimension_numbers<[1], [0], [0], [1], [0, 0, 1, 1], [], []>} : vector<8x32xbf16>, vector<32x32xbf16>, vector<8x32xf32> -> vector<8x32xf32>
    %14 = vector.broadcast %7 : vector<1x32xf32> to vector<8x32xf32>
    %15 = arith.addf %13, %14 : vector<8x32xf32>
    %cst_15 = arith.constant 0.000000e+00 : f32
    %16 = vector.broadcast %cst_15 : f32 to vector<8x32xf32>
    %17 = arith.maximumf %15, %16 : vector<8x32xf32>
    %18 = arith.truncf %17 : vector<8x32xf32> to vector<8x32xbf16>
    %cst_16 = arith.constant dense<0.000000e+00> : vector<8x32xf32>
    %19 = tpu.matmul %18, %8, %cst_16 {dimension_numbers = #tpu.dot_dimension_numbers<[1], [0], [0], [1], [0, 0, 1, 1], [], []>} : vector<8x32xbf16>, vector<32x32xbf16>, vector<8x32xf32> -> vector<8x32xf32>
    %20 = vector.broadcast %9 : vector<1x32xf32> to vector<8x32xf32>
    %21 = arith.addf %19, %20 : vector<8x32xf32>
    %22 = arith.addf %21, %5 : vector<8x32xf32>
    %c0_17 = arith.constant 0 : index
    %c0_18 = arith.constant 0 : index
    %23 = vector.load %arg8[%c0_17, %c0_18] : memref<32x32xbf16, #tpu.memory_space<vmem>>, vector<32x32xbf16>
    %c0_19 = arith.constant 0 : index
    %c0_20 = arith.constant 0 : index
    %24 = vector.load %arg9[%c0_19, %c0_20] : memref<1x32xf32, #tpu.memory_space<vmem>>, vector<1x32xf32>
    %c0_21 = arith.constant 0 : index
    %c0_22 = arith.constant 0 : index
    %25 = vector.load %arg10[%c0_21, %c0_22] : memref<32x32xbf16, #tpu.memory_space<vmem>>, vector<32x32xbf16>
    %c0_23 = arith.constant 0 : index
    %c0_24 = arith.constant 0 : index
    %26 = vector.load %arg11[%c0_23, %c0_24] : memref<1x32xf32, #tpu.memory_space<vmem>>, vector<1x32xf32>
    %cst_25 = arith.constant 0.000000e+00 : f32
    %27 = vector.broadcast %cst_25 : f32 to vector<8x32xf32>
    %28 = arith.maximumf %22, %27 : vector<8x32xf32>
    %29 = arith.truncf %28 : vector<8x32xf32> to vector<8x32xbf16>
    %cst_26 = arith.constant dense<0.000000e+00> : vector<8x32xf32>
    %30 = tpu.matmul %29, %23, %cst_26 {dimension_numbers = #tpu.dot_dimension_numbers<[1], [0], [0], [1], [0, 0, 1, 1], [], []>} : vector<8x32xbf16>, vector<32x32xbf16>, vector<8x32xf32> -> vector<8x32xf32>
    %31 = vector.broadcast %24 : vector<1x32xf32> to vector<8x32xf32>
    %32 = arith.addf %30, %31 : vector<8x32xf32>
    %cst_27 = arith.constant 0.000000e+00 : f32
    %33 = vector.broadcast %cst_27 : f32 to vector<8x32xf32>
    %34 = arith.maximumf %32, %33 : vector<8x32xf32>
    %35 = arith.truncf %34 : vector<8x32xf32> to vector<8x32xbf16>
    %cst_28 = arith.constant dense<0.000000e+00> : vector<8x32xf32>
    %36 = tpu.matmul %35, %25, %cst_28 {dimension_numbers = #tpu.dot_dimension_numbers<[1], [0], [0], [1], [0, 0, 1, 1], [], []>} : vector<8x32xbf16>, vector<32x32xbf16>, vector<8x32xf32> -> vector<8x32xf32>
    %37 = vector.broadcast %26 : vector<1x32xf32> to vector<8x32xf32>
    %38 = arith.addf %36, %37 : vector<8x32xf32>
    %39 = arith.addf %38, %22 : vector<8x32xf32>
    %40 = arith.truncf %39 : vector<8x32xf32> to vector<8x32xbf16>
    %c0_29 = arith.constant 0 : index
    %c0_30 = arith.constant 0 : index
    %41 = vector.load %arg12[%c0_29, %c0_30] : memref<32x128xbf16, #tpu.memory_space<vmem>>, vector<32x128xbf16>
    %cst_31 = arith.constant dense<0.000000e+00> : vector<8x128xf32>
    %42 = tpu.matmul %40, %41, %cst_31 {dimension_numbers = #tpu.dot_dimension_numbers<[1], [0], [0], [1], [0, 0, 1, 1], [], []>} : vector<8x32xbf16>, vector<32x128xbf16>, vector<8x128xf32> -> vector<8x128xf32>
    %c0_32 = arith.constant 0 : index
    %c0_33 = arith.constant 0 : index
    %43 = vector.load %arg13[%c0_32, %c0_33] : memref<1x128xf32, #tpu.memory_space<vmem>>, vector<1x128xf32>
    %44 = vector.broadcast %43 : vector<1x128xf32> to vector<8x128xf32>
    %45 = arith.addf %42, %44 : vector<8x128xf32>
    %c0_34 = arith.constant 0 : index
    %c0_35 = arith.constant 0 : index
    %46 = vector.load %arg14[%c0_34, %c0_35] : memref<8x128xf32, #tpu.memory_space<vmem>>, vector<8x128xf32>
    tpu.vector_store %arg14[%c0_34, %c0_35], %45 {strides = array<i32>} : memref<8x128xf32, #tpu.memory_space<vmem>>, vector<8x128xf32>,
    return
  }
  func.func @transform_0(%arg0: i32) -> (i32, i32) {
    %c0_i32 = arith.constant 0 : i32
    %c0_i32_0 = arith.constant 0 : i32
    return %arg0, %c0_i32 : i32, i32
  }
  func.func @transform_1(%arg0: i32) -> (i32, i32) {
    %c0_i32 = arith.constant 0 : i32
    %c0_i32_0 = arith.constant 0 : i32
    %c0_i32_1 = arith.constant 0 : i32
    return %c0_i32, %c0_i32_0 : i32, i32
  }
  func.func @transform_2(%arg0: i32) -> (i32, i32) {
    %c0_i32 = arith.constant 0 : i32
    %c0_i32_0 = arith.constant 0 : i32
    %c0_i32_1 = arith.constant 0 : i32
    return %c0_i32, %c0_i32_0 : i32, i32
  }
  func.func @transform_3(%arg0: i32) -> (i32, i32) {
    %c0_i32 = arith.constant 0 : i32
    %c0_i32_0 = arith.constant 0 : i32
    %c0_i32_1 = arith.constant 0 : i32
    return %c0_i32, %c0_i32_0 : i32, i32
  }
  func.func @transform_4(%arg0: i32) -> (i32, i32) {
    %c0_i32 = arith.constant 0 : i32
    %c0_i32_0 = arith.constant 0 : i32
    %c0_i32_1 = arith.constant 0 : i32
    return %c0_i32, %c0_i32_0 : i32, i32
  }
  func.func @transform_5(%arg0: i32) -> (i32, i32) {
    %c0_i32 = arith.constant 0 : i32
    %c0_i32_0 = arith.constant 0 : i32
    %c0_i32_1 = arith.constant 0 : i32
    return %c0_i32, %c0_i32_0 : i32, i32
  }
  func.func @transform_6(%arg0: i32) -> (i32, i32) {
    %c0_i32 = arith.constant 0 : i32
    %c0_i32_0 = arith.constant 0 : i32
    %c0_i32_1 = arith.constant 0 : i32
    return %c0_i32, %c0_i32_0 : i32, i32
  }
  func.func @transform_7(%arg0: i32) -> (i32, i32) {
    %c0_i32 = arith.constant 0 : i32
    %c0_i32_0 = arith.constant 0 : i32
    %c0_i32_1 = arith.constant 0 : i32
    return %c0_i32, %c0_i32_0 : i32, i32
  }
  func.func @transform_8(%arg0: i32) -> (i32, i32) {
    %c0_i32 = arith.constant 0 : i32
    %c0_i32_0 = arith.constant 0 : i32
    %c0_i32_1 = arith.constant 0 : i32
    return %c0_i32, %c0_i32_0 : i32, i32
  }
  func.func @transform_9(%arg0: i32) -> (i32, i32) {
    %c0_i32 = arith.constant 0 : i32
    %c0_i32_0 = arith.constant 0 : i32
    %c0_i32_1 = arith.constant 0 : i32
    return %c0_i32, %c0_i32_0 : i32, i32
  }
  func.func @transform_10(%arg0: i32) -> (i32, i32) {
    %c0_i32 = arith.constant 0 : i32
    %c0_i32_0 = arith.constant 0 : i32
    %c0_i32_1 = arith.constant 0 : i32
    return %c0_i32, %c0_i32_0 : i32, i32
  }
  func.func @transform_11(%arg0: i32) -> (i32, i32) {
    %c0_i32 = arith.constant 0 : i32
    %c0_i32_0 = arith.constant 0 : i32
    %c0_i32_1 = arith.constant 0 : i32
    return %c0_i32, %c0_i32_0 : i32, i32
  }
  func.func @transform_12(%arg0: i32) -> (i32, i32) {
    %c0_i32 = arith.constant 0 : i32
    %c0_i32_0 = arith.constant 0 : i32
    %c0_i32_1 = arith.constant 0 : i32
    return %c0_i32, %c0_i32_0 : i32, i32
  }
  func.func @transform_13(%arg0: i32) -> (i32, i32) {
    %c0_i32 = arith.constant 0 : i32
    %c0_i32_0 = arith.constant 0 : i32
    return %arg0, %c0_i32 : i32, i32
  }
}

</mosaic_0001>

<bundles_post_ra>
// kernel: tpu_custom_call.1
= control target key start
LH: loop header
LB: loop body
LE: loop exit
PB: predicated region body
PF: predicated region fallthrough
CT: control target
= control target key end

     0   :  { %18 = vsyncpa [#allocation3], 0  ;;  %s894_s0 = inlined_call_operand.hbm [shape: bf16[8,128], index: 0, kind: input, shape index: {}]   ;;  %s895_s1 = inlined_call_operand.vmem [shape: bf16[128,32], index: 1, kind: input, shape index: {}]   ;;  %s896_s2 = inlined_call_operand.vmem [shape: f32[1,32], index: 2, kind: input, shape index: {}]   ;;  %s897_s3 = inlined_call_operand.vmem [shape: bf16[32,32], index: 3, kind: input, shape index: {}]   ;;  %s898_s4 = inlined_call_operand.vmem [shape: f32[1,32], index: 4, kind: input, shape index: {}]   ;;  %s899_s5 = inlined_call_operand.vmem [shape: bf16[32,32], index: 5, kind: input, shape index: {}]   ;;  %s900_s6 = inlined_call_operand.vmem [shape: f32[1,32], index: 6, kind: input, shape index: {}]   ;;  %s901_s7 = inlined_call_operand.vmem [shape: bf16[32,32], index: 7, kind: input, shape index: {}]   ;;  %s902_s8 = inlined_call_operand.vmem [shape: f32[1,32], index: 8, kind: input, shape index: {}]   ;;  %s903_s9 = inlined_call_operand.vmem [shape: bf16[32,32], index: 9, kind: input, shape index: {}]   ;;  %s904_s10 = inlined_call_operand.vmem [shape: f32[1,32], index: 10, kind: input, shape index: {}]   ;;  %s905_s11 = inlined_call_operand.vmem [shape: bf16[32,128], index: 11, kind: input, shape index: {}]   ;;  %s906_s12 = inlined_call_operand.vmem [shape: f32[1,128], index: 12, kind: input, shape index: {}]   ;;  %s907_s13 = inlined_call_operand.hbm [shape: f32[8,128], index: 13, kind: output, shape index: {}]  }
   0x1   :  { %19 = vsyncpa [#allocation4], 0  ;;  %s707_s25 = smov [#allocation2]  }
   0x2   :  { %s26_s26 = sshll.u32 %s707_s25, 4  ;;  %s27_s26 = int_to_ptr.vmem [resolvable:$true] %s26_s26 }
   0x3   :  { %s671_s27 = scalar_lea.vmem %s27_s26, 64  ;;  %p676_p1 = scmp.lt.s32.totalorder %s27_s26, %s27_s26 }
   0x4   :  { %p672_p0 = scmp.ne.s32.totalorder %s27_s26, %s671_s27  ;;  %p677_p2 = scmp.lt.s32.totalorder %s671_s27, %s671_s27 }
   0x6   :  { %p678_p3 = por %p677_p2, %p676_p1 }
   0x8   :  { %p679_p4 = pnand %p678_p3, %p672_p0 }
   0xa   :  { %682 = shalt.err (!%p679_p4)
}
   0xb   :  { %29 = dma.hbm_to_vmem [thread:$0]  %s894_s0, 64, %s27_s26, [#allocation3]  }
   0xc   :  { %703 = dma.done.wait [#allocation3], 64  }
   0xd   :  { %704 = vsyncadd [#allocation3], 4294967232  ;;  %v708_v0 = vmov 0.0   ;;  %vm709_vm0 = vmmov 0   ;;  %v645_v1 = vld [vmem:[%s895_s1 + $0x38] sm:$0xff]   ;;  %v646_v2 = vld [vmem:[%s895_s1 + $0x30] sm:$0xff]  }
   0xe   :  { %581 = vmatprep.subr.bf16.mxu0 %v708_v0  ;;  %597 = vmatprep.mubr.msk.bf16.mxu0 %vm709_vm0, %v708_v0  ;;  %v647_v3 = vld [vmem:[%s895_s1 + $0x28] sm:$0xff]   ;;  %v648_v4 = vld [vmem:[%s895_s1 + $0x20] sm:$0xff]   ;;  %v649_v5 = vld [vmem:[%s895_s1 + $0x18] sm:$0xff]   ;;  %vm200_vm1 = vcmask 261120   ;;  %s710_s0 = smov [#allocation5]  }
   0xf   :  { %601 = vmatprep.subr.bf16.mxu1 %v708_v0  ;;  %605 = vmatprep.mubr.msk.bf16.mxu1 %vm709_vm0, %v708_v0  ;;  %v650_v6 = vld [vmem:[%s895_s1 + $0x10] sm:$0xff]   ;;  %v651_v7 = vld [vmem:[%s895_s1 + $0x8] sm:$0xff]   ;;  %v652_v8 = vld [vmem:[%s895_s1] sm:$0xff]  }
  0x10   :  { %582 = vmatpush3.bf16.msra.mxu0 %v645_v1  ;;  %v58_v9 = vld [vmem:[#allocation2] sm:$0xf]  ;;  %v653_v10 = vld [vmem:[%s897_s3 + $0x8] sm:$0xff]  }
  0x11   :  { %583 = vmatprep.subr.bf16.mxu0 %v708_v0  ;;  %602 = vmatpush3.bf16.msra.mxu1 %v653_v10  ;;  %v654_v11 = vld [vmem:[%s897_s3] sm:$0xff]   ;;  %v655_v18 = vld [vmem:[%s899_s5 + $0x8] sm:$0xff]  }
  0x12   :  { %603 = vmatprep.subr.bf16.mxu1 %v708_v0  ;;  %v528_v12 = vld [vmem:[%s896_s2] ss:$0 sm:$0xff]  ;;  %v657_v30 = vld [vmem:[%s901_s7 + $0x8] sm:$0xff]  }
  0x13   :  { %v656_v21 = vld [vmem:[%s899_s5] sm:$0xff]   ;;  %v659_v40 = vld [vmem:[%s903_s9 + $0x8] sm:$0xff]  }
  0x14   :  { %584 = vmatpush3.bf16.msra.mxu0 %v646_v2  ;;  %v537_v22 = vld [vmem:[%s898_s4] ss:$0 sm:$0xff]  ;;  %v661_v43 = vld [vmem:[%s905_s11 + $0x8] sm:$0xff]  }
  0x15   :  { %585 = vmatprep.subr.bf16.mxu0 %v708_v0  ;;  %604 = vmatpush3.bf16.msra.mxu1 %v654_v11  ;;  %v658_v31 = vld [vmem:[%s901_s7] sm:$0xff]  }
  0x16   :  { %609 = vmatprep.subr.bf16.mxu1 %v708_v0  ;;  %v541_v32 = vld [vmem:[%s900_s6] ss:$0 sm:$0xff] }
  0x17   :  { %v660_v42 = vld [vmem:[%s903_s9] sm:$0xff]  }
  0x18   :  { %586 = vmatpush3.bf16.msra.mxu0 %v647_v3  ;;  %v545_v44 = vld [vmem:[%s902_s8] ss:$0 sm:$0xff] }
  0x19   :  { %587 = vmatprep.subr.bf16.mxu0 %v708_v0  ;;  %v662_v52 = vld [vmem:[%s905_s11] sm:$0xff]   ;;  %s519_s11 = sshll.u32 %s710_s0, 4  ;;  %s520_s11 = int_to_ptr.vmem [resolvable:$true] %s519_s11 }
  0x1a   :  { %v549_v53 = vld [vmem:[%s904_s10] ss:$0 sm:$0xff]  ;;  %s683_s10 = scalar_lea.vmem %s520_s11, 128  ;;  %p688_p6 = scmp.lt.s32.totalorder %s520_s11, %s520_s11 }
  0x1b   :  { %v553_v61 = vld [vmem:[%s906_s12] ss:$0 sm:$0xff]  ;;  %p684_p5 = scmp.ne.s32.totalorder %s520_s11, %s683_s10  ;;  %p689_p7 = scmp.lt.s32.totalorder %s683_s10, %s683_s10 }
  0x1c   :  { %588 = vmatpush3.bf16.msra.mxu0 %v648_v4 }
  0x1d   :  { %589 = vmatprep.subr.bf16.mxu0 %v708_v0  ;;  %p690_p8 = por %p689_p7, %p688_p6 }
  0x1f   :  { %p691_p9 = pnand %p690_p8, %p684_p5 }
  0x20   :  { %590 = vmatpush3.bf16.msra.mxu0 %v649_v5 }
  0x21   :  { %591 = vmatprep.subr.bf16.mxu0 %v708_v0 }
  0x24   :  { %592 = vmatpush3.bf16.msra.mxu0 %v650_v6 }
  0x25   :  { %593 = vmatprep.subr.bf16.mxu0 %v708_v0 }
  0x28   :  { %594 = vmatpush3.bf16.msra.mxu0 %v651_v7 }
  0x29   :  { %595 = vmatprep.subr.bf16.mxu0 %v708_v0 }
  0x2c   :  { %596 = vmatpush3.bf16.msra.mxu0 %v652_v8 }
  0x2d   :  { %633 = vmatprep.subr.bf16.mxu0 %v708_v0 }
  0x2f   :  { %598 = vmatmul.mubr.bf16.vlgmr.msra.gmra.mxu0 %v58_v9 }
  0x30   :  { %637 = vmatprep.mubr.msk.bf16.mxu0 %vm709_vm0, %v708_v0  ;;  %634 = vmatpush3.bf16.msra.mxu0 %v661_v43 }
  0x31   :  { %635 = vmatprep.subr.bf16.mxu0 %v708_v0 }
  0x34   :  { %636 = vmatpush3.bf16.msra.mxu0 %v662_v52 }
  0xef   :  { %v164_v13 = vpop.f32.mrf.mxu0 }
  0xf0   :  { %v165_v14 = vadd.f32 %v528_v12, %v164_v13 }
  0xf1   :  { %v599_v15 = vpop.f32.mrf.mxu0 }
  0xf2   :  { %v180_v16 = vmax.f32 %v165_v14, 0.0 }
  0xf3   :  { %v167_v17 = vpop.f32.mrf.mxu0 }
  0xf4   :  { %v181_v19 = vpack.c.bf16 %v180_v16, %v180_v16 }
  0xf5   :  { %v600_v20 = vpop.f32.mrf.mxu0 }
  0xf6   :  { %606 = vmatmul.mubr.msk.bf16.vlgmr.msra.gmra.mxu1 %vm200_vm1, %v181_v19 }
  0xf7   :  { %610 = vmatpush3.bf16.msra.mxu1 %v655_v18  ;;  %613 = vmatprep.mubr.msk.bf16.mxu1 %vm709_vm0, %v708_v0 }
  0xf8   :  { %611 = vmatprep.subr.bf16.mxu1 %v708_v0 }
  0xfb   :  { %612 = vmatpush3.bf16.msra.mxu1 %v656_v21 }
  0xfc   :  { %617 = vmatprep.subr.bf16.mxu1 %v708_v0 }
 0x1b6   :  { %v238_v23 = vpop.f32.mrf.mxu1 }
 0x1b7   :  { %v239_v24 = vadd.f32 %v537_v22, %v238_v23 }
 0x1b8   :  { %v607_v25 = vpop.f32.mrf.mxu1 }
 0x1b9   :  { %v244_v26 = vmax.f32 %v239_v24, 0.0 }
 0x1ba   :  { %v241_v27 = vpop.f32.mrf.mxu1 }
 0x1bb   :  { %v245_v28 = vpack.c.bf16 %v244_v26, %v244_v26 }
 0x1bc   :  { %v608_v29 = vpop.f32.mrf.mxu1 }
 0x1bd   :  { %614 = vmatmul.mubr.msk.bf16.vlgmr.msra.gmra.mxu1 %vm200_vm1, %v245_v28 }
 0x1be   :  { %621 = vmatprep.mubr.msk.bf16.mxu1 %vm709_vm0, %v708_v0  ;;  %618 = vmatpush3.bf16.msra.mxu1 %v657_v30 }
 0x1bf   :  { %619 = vmatprep.subr.bf16.mxu1 %v708_v0 }
 0x1c2   :  { %620 = vmatpush3.bf16.msra.mxu1 %v658_v31 }
 0x1c3   :  { %625 = vmatprep.subr.bf16.mxu1 %v708_v0 }
 0x27d   :  { %v301_v33 = vpop.f32.mrf.mxu1 }
 0x27e   :  { %v302_v34 = vadd.f32 %v541_v32, %v301_v33 }
 0x27f   :  { %v615_v35 = vpop.f32.mrf.mxu1 }
 0x280   :  { %v307_v36 = vadd.f32 %v302_v34, %v165_v14 }
 0x281   :  { %v304_v37 = vpop.f32.mrf.mxu1 }
 0x282   :  { %v318_v38 = vmax.f32 %v307_v36, 0.0 }
 0x283   :  { %v616_v39 = vpop.f32.mrf.mxu1 }
 0x284   :  { %v319_v41 = vpack.c.bf16 %v318_v38, %v318_v38 }
 0x286   :  { %622 = vmatmul.mubr.msk.bf16.vlgmr.msra.gmra.mxu1 %vm200_vm1, %v319_v41 }
 0x287   :  { %626 = vmatpush3.bf16.msra.mxu1 %v659_v40  ;;  %629 = vmatprep.mubr.msk.bf16.mxu1 %vm709_vm0, %v708_v0 }
 0x288   :  { %627 = vmatprep.subr.bf16.mxu1 %v708_v0 }
 0x28b   :  { %628 = vmatpush3.bf16.msra.mxu1 %v660_v42 }
 0x346   :  { %v375_v45 = vpop.f32.mrf.mxu1 }
 0x347   :  { %v376_v46 = vadd.f32 %v545_v44, %v375_v45 }
 0x348   :  { %v623_v47 = vpop.f32.mrf.mxu1 }
 0x349   :  { %v381_v48 = vmax.f32 %v376_v46, 0.0 }
 0x34a   :  { %v378_v49 = vpop.f32.mrf.mxu1 }
 0x34b   :  { %v382_v50 = vpack.c.bf16 %v381_v48, %v381_v48 }
 0x34c   :  { %v624_v51 = vpop.f32.mrf.mxu1 }
 0x34d   :  { %630 = vmatmul.mubr.msk.bf16.vlgmr.msra.gmra.mxu1 %vm200_vm1, %v382_v50 }
 0x40d   :  { %v438_v54 = vpop.f32.mrf.mxu1 }
 0x40e   :  { %v439_v55 = vadd.f32 %v549_v53, %v438_v54 }
 0x40f   :  { %v631_v56 = vpop.f32.mrf.mxu1 }
 0x410   :  { %v444_v57 = vadd.f32 %v439_v55, %v307_v36 }
 0x411   :  { %v441_v58 = vpop.f32.mrf.mxu1 }
 0x412   :  { %v445_v59 = vpack.c.bf16 %v444_v57, %v444_v57 }
 0x413   :  { %v632_v60 = vpop.f32.mrf.mxu1 }
 0x414   :  { %638 = vmatmul.mubr.msk.bf16.vlgmr.msra.gmra.mxu0 %vm200_vm1, %v445_v59 }
 0x4d4   :  { %v506_v62 = vpop.f32.mrf.mxu0 }
 0x4d5   :  { %v507_v63 = vadd.f32 %v553_v61, %v506_v62 }
 0x4d6   :  { %v639_v0 = vpop.f32.mrf.mxu0 }
 0x4d7   :  { %512 = vst [vmem:[#allocation5] sm:$0xff] %v507_v63 }
 0x4d8   :  { %v509_v1 = vpop.f32.mrf.mxu0 }
 0x4d9   :  { %694 = shalt.err (!%p691_p9)
}
 0x4da   :  { %522 = dma.vmem_to_hbm [thread:$0]  %s520_s11, 128, %s907_s13, [#allocation4]   ;;  %v640_v2 = vpop.f32.mrf.mxu0 }
 0x4db   :  { %705 = dma.done.wait [#allocation4], 128  }
 0x4dc   :  { %706 = vsyncadd [#allocation4], 4294967168 }
 0x4dd   :  { %526 = vsyncpa [#allocation3], 1 }
 0x4de   :  { %527 = vsyncpa [#allocation4], 1 }

</bundles_post_ra>
